<compile_context>
chip_gen: v6e
topology: v6e:2x2x1
jax: 0.10.0
libtpu: 0.0.40
codegen_flags: <defaults>
</compile_context>

<pallas_src>
import numpy as np
import jax
import jax.numpy as jnp
from jax.experimental import pallas as pl
from jax.experimental.pallas import tpu as pltpu


def _interp_matrix(T1: int, T2: int) -> np.ndarray:
    """[T1, T2] align_corners=True linear interpolation matrix (2 taps/row)."""
    M = np.zeros((T1, T2), dtype=np.float32)
    if T1 == 1:
        M[0, 0] = 1.0
        return M
    pos = np.arange(T1, dtype=np.float64) * (T2 - 1) / (T1 - 1)
    lo = np.minimum(np.floor(pos).astype(np.int64), T2 - 1)
    hi = np.minimum(lo + 1, T2 - 1)
    frac = (pos - lo).astype(np.float32)
    rows = np.arange(T1)
    np.add.at(M, (rows, lo), 1.0 - frac)
    np.add.at(M, (rows, hi), frac)
    return M


def _pick_tm(M: int) -> int:
    """Largest M-tile (<=256, multiple of 8) that still leaves >=2 grid steps."""
    for tm in (256, 128, 64, 32, 16, 8):
        if M % tm == 0 and M // tm >= 2:
            return tm
    return M


def _sign_fwd_kernel(w_ref, cnn_ref, interp_ref, i3d_ref, gw_ref, gb_ref,
                     out_ref):
    # Blend weights (already softmaxed in the wrapper), read as SMEM scalars.
    a0 = w_ref[0]
    a1 = w_ref[1]

    cnn = cnn_ref[...]                                   # [tm, D]  f32

    # FeatureFusion: linear time-interpolation on the MXU (bf16 operands,
    # f32 accumulation) + weighted blend on the VPU in f32.
    i3d_up = jnp.dot(interp_ref[...],                    # [tm, K]  bf16
                     i3d_ref[...].astype(jnp.bfloat16),  # [K, D]   bf16
                     preferred_element_type=jnp.float32)  # [tm, D] f32
    fused = a0 * cnn + a1 * i3d_up                       # [tm, D]  f32

    # TODO(synk): encoder is undefined in the reference module -> identity.

    # Recognition head: Linear(D, V) on bf16 MXU operands + f32 log_softmax.
    scores = jnp.dot(fused.astype(jnp.bfloat16), gw_ref[...],
                     preferred_element_type=jnp.float32) + gb_ref[...]  # [tm, V]
    m = jnp.max(scores, axis=-1, keepdims=True)
    z = scores - m
    lse = jnp.log(jnp.sum(jnp.exp(z), axis=-1, keepdims=True))
    out_ref[...] = (z - lse).astype(out_ref.dtype)


def sign_model_forward(params, sgn_cnn, sgn_i3d):
    """Recognition-path forward. Returns (decoder_outputs=None, gloss_probs[T1,B,V])."""
    B, T1, D = sgn_cnn.shape
    _, T2, _ = sgn_i3d.shape
    V = params["gloss_w"].shape[1]

    M = B * T1              # matmul rows (batch folded into M)
    K = B * T2              # interp contraction dim
    tm = _pick_tm(M)
    grid = (M // tm,)

    # Block-diagonal interpolation matrix [B*T1, B*T2] (constant, bf16).
    interp_bd = np.kron(np.eye(B, dtype=np.float32), _interp_matrix(T1, T2))
    interp_bd = jnp.asarray(interp_bd, dtype=jnp.bfloat16)

    # 2-element softmax of the fusion weights folded into SMEM scalars.
    blend = jax.nn.softmax(params["fusion_weights"].astype(jnp.float32))

    cnn_flat = sgn_cnn.reshape(M, D)                       # [M, D] f32
    i3d_flat = sgn_i3d.reshape(K, D)                       # [K, D] f32
    gloss_w = params["gloss_w"].astype(jnp.bfloat16)       # [D, V] bf16 (MXU operand)
    gloss_b = params["gloss_b"].astype(jnp.float32)        # [1, V] f32

    # VMEM budget (double-buffered pipeline) + headroom.
    vmem_needed = 2 * (tm * D * 4 + tm * K * 2 + K * D * 4
                       + D * V * 2 + V * 4 + tm * V * 4)
    vmem_limit = int(min(vmem_needed * 2 + (4 << 20), 64 << 20))

    cost = pl.CostEstimate(
        flops=2 * M * K * D + 2 * M * D * V,
        transcendentals=M * V + M,
        bytes_accessed=4 * M * D + 4 * K * D + 2 * M * K
                       + 2 * D * V + 4 * V + 4 * M * V,
    )

    out_flat = pl.pallas_call(
        _sign_fwd_kernel,
        out_shape=jax.ShapeDtypeStruct((M, V), jnp.float32),
        grid=grid,
        in_specs=[
            pl.BlockSpec(memory_space=pltpu.MemorySpace.SMEM),  # blend (2,)
            pl.BlockSpec((tm, D), lambda i: (i, 0)),            # cnn row tile
            pl.BlockSpec((tm, K), lambda i: (i, 0)),            # interp row tile
            pl.BlockSpec((K, D), lambda i: (0, 0)),             # i3d (resident)
            pl.BlockSpec((D, V), lambda i: (0, 0)),             # gloss W (resident)
            pl.BlockSpec((1, V), lambda i: (0, 0)),             # gloss b (resident)
        ],
        out_specs=pl.BlockSpec((tm, V), lambda i: (i, 0)),      # sublane/lane dense
        compiler_params=pltpu.CompilerParams(
            dimension_semantics=("parallel",),
            vmem_limit_bytes=vmem_limit),
        cost_estimate=cost,
    )(blend, cnn_flat, interp_bd, i3d_flat, gloss_w, gloss_b)

    # Cheap XLA permute to the PyTorch layout: [M, V] -> [B, T1, V] -> [T1, B, V].
    gloss_probs = jnp.transpose(out_flat.reshape(B, T1, V), (1, 0, 2))

    decoder_outputs = None  # TODO(synk): translation decoder undefined in the source.
    return decoder_outputs, gloss_probs


if __name__ == "__main__":
    # Small, lane-dense demo shapes (D and V multiples of 128, T1 multiple of 8).
    B, T1, T2, D, V = 2, 16, 8, 128, 128

    key = jax.random.PRNGKey(0)
    k_cnn, k_i3d, k_w, k_b = jax.random.split(key, 4)

    sgn_cnn = jax.random.normal(k_cnn, (B, T1, D), dtype=jnp.float32)
    sgn_i3d = jax.random.normal(k_i3d, (B, T2, D), dtype=jnp.float32)

    params = {
        # FeatureFusion: nn.Parameter(torch.tensor([0.5, 0.5]))
        "fusion_weights": jnp.array([0.5, 0.5], dtype=jnp.float32),
        # gloss_output_layer: Linear(D, V)
        "gloss_w": jax.random.normal(k_w, (D, V), dtype=jnp.float32) * 0.02,
        "gloss_b": jax.random.normal(k_b, (1, V), dtype=jnp.float32) * 0.01,
    }

    decoder_outputs, gloss_probabilities = sign_model_forward(
        params, sgn_cnn, sgn_i3d)
    gloss_probabilities = jax.block_until_ready(gloss_probabilities)

    assert gloss_probabilities.shape == (T1, B, V)

    # --- Matched-precision JAX reference (same bf16 MXU casts, f32 accum) ---
    blend = jax.nn.softmax(params["fusion_weights"])
    interp_bd = jnp.asarray(
        np.kron(np.eye(B, dtype=np.float32), _interp_matrix(T1, T2)),
        dtype=jnp.bfloat16)
    i3d_up_m = jnp.dot(interp_bd, sgn_i3d.reshape(B * T2, D).astype(jnp.bfloat16),
                       preferred_element_type=jnp.float32)
    fused_m = blend[0] * sgn_cnn.reshape(B * T1, D) + blend[1] * i3d_up_m
    scores_m = jnp.dot(fused_m.astype(jnp.bfloat16),
                       params["gloss_w"].astype(jnp.bfloat16),
                       preferred_element_type=jnp.float32) + params["gloss_b"]
    ref_m = jnp.transpose(
        jax.nn.log_softmax(scores_m, axis=-1).reshape(B, T1, V), (1, 0, 2))
    assert bool(jnp.allclose(gloss_probabilities, ref_m, atol=1e-4, rtol=1e-4))

    # --- Full-f32 reference (PyTorch-forward math), loose tolerance for bf16 MXU ---
    interp_f = jnp.asarray(_interp_matrix(T1, T2))
    i3d_up_f = jnp.einsum("tk,bkd->btd", interp_f, sgn_i3d)
    fused_f = blend[0] * sgn_cnn + blend[1] * i3d_up_f
    scores_f = jnp.einsum("btd,dv->btv", fused_f, params["gloss_w"]) + params["gloss_b"]
    ref_f = jnp.transpose(jax.nn.log_softmax(scores_f, axis=-1), (1, 0, 2))
    assert float(jnp.max(jnp.abs(gloss_probabilities - ref_f))) < 5e-2

    # log_softmax rows must sum (in prob space) to ~1
    row_sums = jnp.sum(jnp.exp(gloss_probabilities), axis=-1)
    assert bool(jnp.all(jnp.abs(row_sums - 1.0) < 1e-3))

    print("KERNEL_OK")
</pallas_src>

<mosaic_0001>
module attributes {stable_mosaic.version = 11 : i64} {
  func.func @_sign_fwd_kernel(%arg0: i32, %arg1: memref<2xf32, #tpu.memory_space<smem>>, %arg2: memref<16x128xf32, #tpu.memory_space<vmem>>, %arg3: memref<16x16xbf16, #tpu.memory_space<vmem>>, %arg4: memref<16x128xf32, #tpu.memory_space<vmem>>, %arg5: memref<128x128xbf16, #tpu.memory_space<vmem>>, %arg6: memref<1x128xf32, #tpu.memory_space<vmem>>, %arg7: memref<16x128xf32, #tpu.memory_space<vmem>>) attributes {dimension_semantics = [#tpu.dimension_semantics<parallel>], iteration_bounds = array<i64: 2>, scalar_prefetch = 0 : i64, scratch_operands = 0 : i64, tpu.core_type = #tpu.core_type<tc>, window_params = [{transform_indices = @transform_0, window_bounds = array<i64: 2>}, {transform_indices = @transform_1, window_bounds = array<i64: 16, 128>}, {transform_indices = @transform_2, window_bounds = array<i64: 16, 16>}, {pipeline_mode = #tpu.pipeline_mode<synchronous>, transform_indices = @transform_3, window_bounds = array<i64: 16, 128>}, {pipeline_mode = #tpu.pipeline_mode<synchronous>, transform_indices = @transform_4, window_bounds = array<i64: 128, 128>}, {pipeline_mode = #tpu.pipeline_mode<synchronous>, transform_indices = @transform_5, window_bounds = array<i64: 1, 128>}, {transform_indices = @transform_6, window_bounds = array<i64: 16, 128>}]} {
    %c0 = arith.constant 0 : index
    %0 = memref.load %arg1[%c0] : memref<2xf32, #tpu.memory_space<smem>>
    %c1 = arith.constant 1 : index
    %1 = memref.load %arg1[%c1] : memref<2xf32, #tpu.memory_space<smem>>
    %c0_0 = arith.constant 0 : index
    %c0_1 = arith.constant 0 : index
    %2 = vector.load %arg2[%c0_0, %c0_1] : memref<16x128xf32, #tpu.memory_space<vmem>>, vector<16x128xf32>
    %c0_2 = arith.constant 0 : index
    %c0_3 = arith.constant 0 : index
    %3 = vector.load %arg3[%c0_2, %c0_3] : memref<16x16xbf16, #tpu.memory_space<vmem>>, vector<16x16xbf16>
    %c0_4 = arith.constant 0 : index
    %c0_5 = arith.constant 0 : index
    %4 = vector.load %arg4[%c0_4, %c0_5] : memref<16x128xf32, #tpu.memory_space<vmem>>, vector<16x128xf32>
    %5 = arith.truncf %4 : vector<16x128xf32> to vector<16x128xbf16>
    %cst = arith.constant dense<0.000000e+00> : vector<16x128xf32>
    %6 = tpu.matmul %3, %5, %cst {dimension_numbers = #tpu.dot_dimension_numbers<[1], [0], [0], [1], [0, 0, 1, 1], [], []>} : vector<16x16xbf16>, vector<16x128xbf16>, vector<16x128xf32> -> vector<16x128xf32>
    %7 = vector.broadcast %0 : f32 to vector<16x128xf32>
    %8 = arith.mulf %7, %2 : vector<16x128xf32>
    %9 = vector.broadcast %1 : f32 to vector<16x128xf32>
    %10 = arith.mulf %9, %6 : vector<16x128xf32>
    %11 = arith.addf %8, %10 : vector<16x128xf32>
    %12 = arith.truncf %11 : vector<16x128xf32> to vector<16x128xbf16>
    %c0_6 = arith.constant 0 : index
    %c0_7 = arith.constant 0 : index
    %13 = vector.load %arg5[%c0_6, %c0_7] : memref<128x128xbf16, #tpu.memory_space<vmem>>, vector<128x128xbf16>
    %cst_8 = arith.constant dense<0.000000e+00> : vector<16x128xf32>
    %14 = tpu.matmul %12, %13, %cst_8 {dimension_numbers = #tpu.dot_dimension_numbers<[1], [0], [0], [1], [0, 0, 1, 1], [], []>} : vector<16x128xbf16>, vector<128x128xbf16>, vector<16x128xf32> -> vector<16x128xf32>
    %c0_9 = arith.constant 0 : index
    %c0_10 = arith.constant 0 : index
    %15 = vector.load %arg6[%c0_9, %c0_10] : memref<1x128xf32, #tpu.memory_space<vmem>>, vector<1x128xf32>
    %16 = vector.broadcast %15 : vector<1x128xf32> to vector<16x128xf32>
    %17 = arith.addf %14, %16 : vector<16x128xf32>
    %cst_11 = arith.constant dense<0xFF800000> : vector<16xf32>
    %18 = vector.multi_reduction <maximumf>, %17, %cst_11 [1] : vector<16x128xf32> to vector<16xf32>
    %19 = vector.shape_cast %18 : vector<16xf32> to vector<16x1xf32>
    %20 = vector.broadcast %19 : vector<16x1xf32> to vector<16x128xf32>
    %21 = arith.subf %17, %20 : vector<16x128xf32>
    %22 = math.exp %21 : vector<16x128xf32>
    %cst_12 = arith.constant dense<0.000000e+00> : vector<16xf32>
    %23 = vector.multi_reduction <add>, %22, %cst_12 [1] : vector<16x128xf32> to vector<16xf32>
    %24 = vector.shape_cast %23 : vector<16xf32> to vector<16x1xf32>
    %25 = math.log %24 : vector<16x1xf32>
    %26 = vector.broadcast %25 : vector<16x1xf32> to vector<16x128xf32>
    %27 = arith.subf %21, %26 : vector<16x128xf32>
    %c0_13 = arith.constant 0 : index
    %c0_14 = arith.constant 0 : index
    %28 = vector.load %arg7[%c0_13, %c0_14] : memref<16x128xf32, #tpu.memory_space<vmem>>, vector<16x128xf32>
    tpu.vector_store %arg7[%c0_13, %c0_14], %27 {strides = array<i32>} : memref<16x128xf32, #tpu.memory_space<vmem>>, vector<16x128xf32>,
    return
  }
  func.func @transform_0(%arg0: i32) -> i32 {
    %c0_i32 = arith.constant 0 : i32
    %c0_i32_0 = arith.constant 0 : i32
    return %c0_i32 : i32
  }
  func.func @transform_1(%arg0: i32) -> (i32, i32) {
    %c0_i32 = arith.constant 0 : i32
    %c0_i32_0 = arith.constant 0 : i32
    return %arg0, %c0_i32 : i32, i32
  }
  func.func @transform_2(%arg0: i32) -> (i32, i32) {
    %c0_i32 = arith.constant 0 : i32
    %c0_i32_0 = arith.constant 0 : i32
    return %arg0, %c0_i32 : i32, i32
  }
  func.func @transform_3(%arg0: i32) -> (i32, i32) {
    %c0_i32 = arith.constant 0 : i32
    %c0_i32_0 = arith.constant 0 : i32
    %c0_i32_1 = arith.constant 0 : i32
    return %c0_i32, %c0_i32_0 : i32, i32
  }
  func.func @transform_4(%arg0: i32) -> (i32, i32) {
    %c0_i32 = arith.constant 0 : i32
    %c0_i32_0 = arith.constant 0 : i32
    %c0_i32_1 = arith.constant 0 : i32
    return %c0_i32, %c0_i32_0 : i32, i32
  }
  func.func @transform_5(%arg0: i32) -> (i32, i32) {
    %c0_i32 = arith.constant 0 : i32
    %c0_i32_0 = arith.constant 0 : i32
    %c0_i32_1 = arith.constant 0 : i32
    return %c0_i32, %c0_i32_0 : i32, i32
  }
  func.func @transform_6(%arg0: i32) -> (i32, i32) {
    %c0_i32 = arith.constant 0 : i32
    %c0_i32_0 = arith.constant 0 : i32
    return %arg0, %c0_i32 : i32, i32
  }
}

</mosaic_0001>

<bundles_post_ra>
// kernel: tpu_custom_call.1
= control target key start
LH: loop header
LB: loop body
LE: loop exit
PB: predicated region body
PF: predicated region fallthrough
CT: control target
= control target key end

     0   :  { %s1217_s0 = inlined_call_operand.vmem [shape: f32[2], index: 0, kind: input, shape index: {}]   ;;  %s1218_s1 = inlined_call_operand.hbm [shape: f32[32,128], index: 1, kind: input, shape index: {}]   ;;  %s1219_s2 = inlined_call_operand.vmem [shape: bf16[32,16], index: 2, kind: input, shape index: {}]   ;;  %s1220_s3 = inlined_call_operand.vmem [shape: f32[16,128], index: 3, kind: input, shape index: {}]   ;;  %s1221_s4 = inlined_call_operand.hbm [shape: bf16[128,128], index: 4, kind: input, shape index: {}]   ;;  %s1222_s5 = inlined_call_operand.vmem [shape: f32[1,128], index: 5, kind: input, shape index: {}]   ;;  %s1223_s6 = inlined_call_operand.hbm [shape: f32[32,128], index: 6, kind: output, shape index: {}]  }
   0x1   :  { %1230 = sst [smem:[#allocation16_spill]] %s1217_s0 }
   0x2   :  { %11 = vsyncpa [#allocation5], 0 }
   0x3   :  { %12 = vsyncpa [#allocation3], 0 }
   0x4   :  { %14 = vsyncpa [#allocation3 + $0x1], 0 }
   0x5   :  { %15 = vsyncpa [#allocation8], 0 }
   0x6   :  { %16 = vsyncpa [#allocation4], 0 }
   0x7   :  { %18 = vsyncpa [#allocation4 + $0x1], 0  ;;  %s1000_s21 = smov 0   ;;  %s1002_s22 = smov 0  }
   0x8   :  { %s1004_s23 = smov 0   ;;  %s1006_s24 = smov 0  }
   0x9 LB: > { %1231 = sst [smem:[#allocation14_spill]] %s947_s23  ;;  %s1021_s25 = sadd.s32 4294967295, %s951_s24   ;;  %s951_s24 = sphi %s1006_s24, %s1255_s24   ;;  %s947_s23 = sphi %s1004_s23, %s1252_s23   ;;  %s943_s22 = sphi %s1002_s22, %s1254_s22   ;;  %s939_s21 = sphi %s1000_s21, %s1253_s21  }
   0xa   : > { %s647_s26 = sadd.s32 4294967294, %s951_s24   ;;  %s1025_s27 = sadd.s32 1, %s951_s24  }
   0xb   : > { %s52_s28 = sadd.s32 1, %s947_s23  ;;  %s49_s29 = ssub.s32 %s951_s24, %s1025_s27 }
   0xc   : > { %p59_p0 = scmp.ne.s32.totalorder %s947_s23, %s943_s22  ;;  %p50_p1 = scmp.eq.s32.totalorder %s49_s29, 0 }
   0xd   : > { %p60_p2 = scmp.eq.s32.totalorder %s951_s24, 0  ;;  %p65_p3 = scmp.ne.s32.totalorder %s943_s22, %s939_s21 }
   0xe   : > { %p1224_p4 = scmp.eq.s32.totalorder %s1021_s25, 0  ;;  %p178_p7 = scmp.eq.s32.totalorder %s1021_s25, 1 }
   0xf   : > { %s1037_s30 = scalar_select %p50_p1, %s947_s23, %s52_s28  }
  0x10   : > { %p1039_p5 = por %p60_p2, %p59_p0  ;;  %p1045_p6 = por %p1224_p4, %p65_p3 }
  0x11   : > { %1232 = sst [smem:[#allocation15_spill]] %s1037_s30  ;;  %p184_p8 = scmp.eq.s32.totalorder %s647_s26, 1 }
  0x12   : > { %s1234_s8 = scalar_select %p1045_p6, 1, 0 }
  0x13   : > { %p648_p9 = scmp.ge.s32.totalorder %s951_s24, 1  ;;  %p191_p10 = scmp.lt.s32.totalorder %s951_s24, 3 }
  0x14   : > { %p1052_p11 = por %p178_p7, %p59_p0  ;;  %p1056_p12 = por %p184_p8, %p65_p3 }
  0x15   : > { %p1060_p13 = pnand %p648_p9, %p191_p10  ;;  %s1238_s0 = sld [smem:[#allocation16_spill]] }
  0x16   : > { %s1235_s9 = scalar_select %p1052_p11, 1, 0 }
  0x17   : > { %s1236_s10 = scalar_select %p1056_p12, 1, 0 }
  0x18   : > { %s1237_s11 = scalar_select %p1060_p13, 1, 0 }
  0x19   : > { %p730_p1 = pneg %p1060_p13  ;;  %p747_p2 = scmp.lt.s32.totalorder %s951_s24, 2 }
  0x1a   : > { %s953_s17 = smov [#allocation7]  }
  0x1b   : > { %s204_s14 = sshll.u32 %s1238_s0, 4  ;;  %p1073_p7 = pnand %p730_p1, %p1224_p4  ;;  %s205_s14 = int_to_ptr.vmem [resolvable:$true] %s204_s14 }
  0x1c   : > { %p1079_p3 = pnand %p747_p2, %p1039_p5  ;;  %s217_s18 = sshll.u32 %s953_s17, 4  ;;  %s218_s18 = int_to_ptr.vmem [resolvable:$true] %s217_s18 }
  0x1d   : > { %s810_s19 = scalar_lea.vmem %s205_s14, 16  ;;  %p812_p9 = pneg %p1073_p7 }
  0x1e   : > { %s1240_s16 = scalar_select %p1079_p3, 1, 0 }
  0x1f   : > { %p811_p8 = scmp.ne.s32.totalorder %s205_s14, %s810_s19  ;;  %p818_p0 = scmp.lt.s32.totalorder %s205_s14, %s205_s14 }
  0x20   : > { %p819_p4 = scmp.lt.s32.totalorder %s810_s19, %s810_s19 }
  0x21   : > { %p813_p10 = pnand %p812_p9, %p811_p8 }
  0x22   : > { %p820_p12 = por %p819_p4, %p818_p0 }
  0x23   : > { %p814_p1 = pneg %p813_p10 }
  0x25   : > { %p821_p11 = pnand %p820_p12, %p814_p1 }
  0x27   : > { %824 = shalt.err (!%p821_p11)
}
  0x28   : > { %s954_s20 = smov [#allocation2]   ;;  %s234_s26 = sand.u32 1, %s947_s23  }
  0x29   : > { %733 = dma.vmem_to_smem (!%p1073_p7), %s205_s14, 16, %s954_s20, [#allocation5]  }
  0x2a   : > { %s836_s28 = scalar_lea.vmem %s218_s18, 1024  ;;  %p844_p8 = scmp.lt.s32.totalorder %s218_s18, %s218_s18 }
  0x2b   : > { %p837_p5 = scmp.ne.s32.totalorder %s218_s18, %s836_s28  ;;  %p845_p10 = scmp.lt.s32.totalorder %s836_s28, %s836_s28 }
  0x2d   : > { %p839_p2 = pnand %p837_p5, %p812_p9  ;;  %p846_p13 = por %p845_p10, %p844_p8 }
  0x2f   : > { %p840_p6 = pneg %p839_p2 }
  0x31   : > { %p847_p3 = pnand %p846_p13, %p840_p6 }
  0x33   : > { %850 = shalt.err (!%p847_p3)
}
  0x34   : > { %s955_s29 = smov 64   ;;  %s956_s7 = smov 4  }
  0x35   : > { %736 = dma.hbm_to_vmem [thread:$0]  (!%p1073_p7), %s1221_s4, 1024, %s218_s18, [#allocation8], %s955_s29, %s955_s29, %s956_s7  }
  0x36   : > { %s652_s14 = sshll.u32 %s234_s26, 4  ;;  %s679_s17 = sshll.u32 %s951_s24, 8 }
  0x37   : > { %s1103_s0 = scalar_lea.hbm %s1218_s1, %s679_s17  ;;  %s238_s28 = scalar_lea.vmem [#allocation6], %s652_s14 }
  0x38   : > { %s245_s30 = sshll.u32 %s238_s28, 4  ;;  %s1107_s23 = scalar_lea.sflag [#allocation3], %s234_s26  ;;  %s1105_s30 = int_to_ptr.vmem [resolvable:$true] %s245_s30 }
  0x39   : > { %s851_s15 = scalar_lea.hbm %s1103_s0, 256  ;;  %p1241_p6 = scmp.ne.s32.totalorder %s1240_s16, 0 }
  0x3a   : > { %p852_p4 = scmp.ne.s32.totalorder %s1103_s0, %s851_s15  ;;  %s856_s7 = scalar_lea.hbm %s1218_s1, 512 }
  0x3b   : > { %p853_p11 = pneg %p1241_p6  ;;  %p857_p0 = scmp.lt.s32.totalorder %s1103_s0, %s1218_s1 }
  0x3c   : > { %p858_p7 = scmp.lt.s32.totalorder %s856_s7, %s851_s15 }
  0x3d   : > { %p854_p12 = pnand %p853_p11, %p852_p4 }
  0x3e   : > { %p859_p3 = por %p858_p7, %p857_p0 }
  0x3f   : > { %p855_p13 = pneg %p854_p12 }
  0x41   : > { %p860_p9 = pnand %p859_p3, %p855_p13 }
  0x43   : > { %863 = shalt.err (!%p860_p9)
}
  0x44   : > { %s864_s26 = scalar_lea.vmem %s1105_s30, 256  ;;  %s957_s14 = smov [#allocation6]  }
  0x45   : > { %p865_p1 = scmp.ne.s32.totalorder %s1105_s30, %s864_s26  ;;  %s869_s17 = sshll.u32 %s957_s14, 4  ;;  %s870_s17 = int_to_ptr.vmem [resolvable:$false] %s869_s17 }
  0x46   : > { %s871_s19 = scalar_lea.vmem %s870_s17, 512  ;;  %p872_p8 = scmp.lt.s32.totalorder %s1105_s30, %s870_s17 }
  0x47   : > { %p867_p5 = pnand %p865_p1, %p853_p11  ;;  %p873_p10 = scmp.lt.s32.totalorder %s871_s19, %s864_s26 }
  0x49   : > { %p868_p2 = pneg %p867_p5  ;;  %p874_p4 = por %p873_p10, %p872_p8 }
  0x4b   : > { %p875_p12 = pnand %p874_p4, %p868_p2 }
  0x4d   : > { %878 = shalt.err (!%p875_p12)
}
  0x4e   : > { %s958_s20 = smov 128   ;;  %s959_s28 = smov 8  }
  0x4f   : > { %740 = dma.hbm_to_vmem [thread:$0]  (!%p1241_p6), %s1103_s0, 256, %s1105_s30, %s1107_s23, %s958_s20, %s958_s20, %s959_s28  }
  0x50   : > { %p1242_p11 = scmp.ne.s32.totalorder %s1237_s11, 0 }
  0x51   : > { %p1243_p13 = scmp.eq.s32.totalorder (!%p1242_p11), %s1021_s25, 0 }
  0x52   : > { %266 = sbr.rel (%p1242_p11) target bundleno = 832 (0x340), region = 44 }
  0x57   : > { %922 = dma.done.wait (%p1243_p13), [#allocation5], 16   ;;  %p1244_p0 = pmov %p1243_p13 }
  0x58   : > { %s1135_s15 = sand.u32 1, %s943_s22   ;;  %p1245_p6 = scmp.ne.s32.totalorder %s1234_s8, 0 }
  0x59   : > { %924 = vsyncadd (%p1244_p0), [#allocation5], 4294967280  ;;  %s657_s18 = sshll.u32 %s1135_s15, 4  ;;  %s273_s29 = scalar_lea.sflag [#allocation3], %s1135_s15 }
  0x5a   : > { %s1141_s0 = scalar_lea.vmem [#allocation6], %s657_s18 }
  0x5b   : > { %926 = dma.done.wait (%p1245_p6), %s273_s29, 256  }
  0x5c   : > { %928 = vsyncadd (%p1245_p6), %s273_s29, 4294967040  ;;  %p1246_p7 = pmov %p1244_p0 }
  0x5d   : > { %p1247_p3 = pmov %p1244_p0 }
  0x5e   : > { %930 = dma.done.wait (%p1246_p7), [#allocation8], 1024  }
  0x5f   : > { %932 = vsyncadd (%p1247_p3), [#allocation8], 4294966272 }
  0x60   : > { %285 = sfence }
  0x61   : > { %v330_v0 = vld [vmem:[%s1220_s3] sm:$0xff]  ;;  %v331_v1 = vld [vmem:[%s1220_s3 + $0x8] sm:$0xff]  ;;  %s660_s7 = sshll.u32 %s1021_s25, 1  ;;  %v960_v2 = vmov 0.0   ;;  %vm961_vm0 = vmmov 0   ;;  %v794_v4 = vld [vmem:[#allocation7 + $0x38] sm:$0xff]  }
  0x62   : > { %692 = vmatprep.subr.bf16.mxu0 %v960_v2  ;;  %v332_v3 = vpack.c.bf16 %v331_v1, %v330_v0  ;;  %694 = vmatprep.mubr.msk.bf16.mxu0 %vm961_vm0, %v960_v2  ;;  %p317_p9 = scmp.lt.s32.totalorder %s660_s7, 3  ;;  %v795_v5 = vld [vmem:[#allocation7 + $0x30] sm:$0xff]   ;;  %vm338_vm1 = vcmask 130048   ;;  %v796_v6 = vld [vmem:[#allocation7 + $0x28] sm:$0xff]   ;;  %v797_v8 = vld [vmem:[#allocation7 + $0x20] sm:$0xff]   ;;  %s324_s14 = sld [smem:[#allocation2]] }
  0x63   : > { %698 = vmatprep.subr.bf16.mxu1 %v960_v2  ;;  %714 = vmatprep.mubr.msk.bf16.mxu1 %vm961_vm0, %v960_v2  ;;  %v798_v9 = vld [vmem:[#allocation7 + $0x18] sm:$0xff]   ;;  %v799_v10 = vld [vmem:[#allocation7 + $0x10] sm:$0xff]   ;;  %v800_v11 = vld [vmem:[#allocation7 + $0x8] sm:$0xff]   ;;  %s662_s17 = sld [smem:[#allocation2 + $0x1]]  ;;  %s680_s28 = sshll.u32 %s1021_s25, 8 }
  0x64   : > { %693 = vmatpush3.bf16.msra.mxu0 %v332_v3  ;;  %s1257_s7 = smov (!%p317_p9, %s660_s7), 3  ;;  %699 = vmatpush3.bf16.msra.mxu1 %v794_v4  ;;  %v801_v12 = vld [vmem:[#allocation7] sm:$0xff]   ;;  %v327_v17 = vld [vmem:[%s1141_s0 + $0x8] sm:$0xff]  ;;  %s314_s29 = scalar_lea.vmem [#allocation9], %s657_s18 }
  0x65   : > { %700 = vmatprep.subr.bf16.mxu1 %v960_v2  ;;  %s661_s8 = sshll.u32 %s1257_s7, 2  ;;  %v326_v13 = vld [vmem:[%s1141_s0] sm:$0xff]  ;;  %s540_s0 = sshll.u32 %s314_s29, 4  ;;  %s1174_s0 = int_to_ptr.vmem [resolvable:$true] %s540_s0 }
  0x66   : > { %s320_s26 = scalar_lea.vmem %s1219_s2, %s661_s8  ;;  %v665_v28 = vld [vmem:[%s1222_s5] ss:$0 sm:$0xff]  ;;  %s1172_s11 = scalar_lea.hbm %s1223_s6, %s680_s28 }
  0x67   : > { %v793_v7 = vld [vmem:[%s320_s26] sm:$0xff]   ;;  %s527_s16 = scalar_lea.sflag [#allocation4], %s1135_s15  ;;  %s879_s25 = scalar_lea.vmem %s1174_s0, 256 }
  0x68   : > { %701 = vmatpush3.bf16.msra.mxu1 %v795_v5  ;;  %695 = vmatmul.mubr.msk.bf16.vlgmr.msra.gmra.mxu0 %vm338_vm1, %v793_v7  ;;  %v383_v15 = vstv %s324_s14  ;;  %p880_p1 = scmp.ne.s32.totalorder %s1174_s0, %s879_s25  ;;  %p1248_p5 = scmp.ne.s32.totalorder %s1235_s9, 0 }
  0x69   : > { %702 = vmatprep.subr.bf16.mxu1 %v960_v2  ;;  %v386_v16 = vstv %s662_s17  ;;  %v384_v19 = vmul.f32 %v383_v15, %v326_v13  ;;  %v385_v21 = vmul.f32 %v383_v15, %v327_v17  ;;  %s962_s18 = smov [#allocation9]  }
  0x6a   : > { %p881_p2 = pnand %p880_p1, %p1248_p5  ;;  %s883_s7 = sshll.u32 %s962_s18, 4  ;;  %s884_s7 = int_to_ptr.vmem [resolvable:$false] %s883_s7 }
  0x6b   : > { %s885_s8 = scalar_lea.vmem %s884_s7, 512  ;;  %p886_p10 = scmp.lt.s32.totalorder %s1174_s0, %s884_s7 }
  0x6c   : > { %703 = vmatpush3.bf16.msra.mxu1 %v796_v6  ;;  %p882_p8 = pneg %p881_p2  ;;  %p887_p4 = scmp.lt.s32.totalorder %s885_s8, %s879_s25 }
  0x6d   : > { %704 = vmatprep.subr.bf16.mxu1 %v960_v2 }
  0x6e   : > { %p888_p12 = por %p887_p4, %p886_p10 }
  0x70   : > { %705 = vmatpush3.bf16.msra.mxu1 %v797_v8  ;;  %p889_p11 = pnand %p888_p12, %p882_p8 }
  0x71   : > { %706 = vmatprep.subr.bf16.mxu1 %v960_v2 }
  0x74   : > { %707 = vmatpush3.bf16.msra.mxu1 %v798_v9 }
  0x75   : > { %708 = vmatprep.subr.bf16.mxu1 %v960_v2 }
  0x78   : > { %709 = vmatpush3.bf16.msra.mxu1 %v799_v10 }
  0x79   : > { %710 = vmatprep.subr.bf16.mxu1 %v960_v2 }
  0x7c   : > { %711 = vmatpush3.bf16.msra.mxu1 %v800_v11 }
  0x7d   : > { %712 = vmatprep.subr.bf16.mxu1 %v960_v2 }
  0x80   : > { %713 = vmatpush3.bf16.msra.mxu1 %v801_v12 }
 0x128   : > { %v376_v14 = vpop.f32.mrf.mxu0 }
 0x129   : > { %v387_v20 = vmul.f32 %v386_v16, %v376_v14 }
 0x12a   : > { %v696_v18 = vpop.f32.mrf.mxu0 }
 0x12b   : > { %v389_v25 = vadd.f32 %v387_v20, %v384_v19 }
 0x12c   : > { %v379_v22 = vpop.f32.mrf.mxu0 }
 0x12d   : > { %v388_v23 = vmul.f32 %v386_v16, %v379_v22 }
 0x12e   : > { %v697_v24 = vpop.f32.mrf.mxu0 }
 0x12f   : > { %v390_v26 = vadd.f32 %v388_v23, %v385_v21 }
 0x131   : > { %v391_v27 = vpack.c.bf16 %v390_v26, %v389_v25 }
 0x133   : > { %715 = vmatmul.mubr.bf16.vlgmr.msra.gmra.mxu1 %v391_v27 }
 0x1f3   : > { %v497_v29 = vpop.f32.mrf.mxu1 }
 0x1f4   : > { %v498_v30 = vadd.f32 %v665_v28, %v497_v29 }
 0x1f5   : > { %v716_v31 = vpop.f32.mrf.mxu1 }
 0x1f6   : > { %504 = vmax.xlane.f32.xlu0 %v498_v30 }
 0x1f7   : > { %v500_v32 = vpop.f32.mrf.mxu1 }
 0x1f8   : > { %v501_v33 = vadd.f32 %v665_v28, %v500_v32 }
 0x1f9   : > { %v717_v34 = vpop.f32.mrf.mxu1 }
 0x1fa   : > { %506 = vmax.xlane.f32.xlu0 %v501_v33 }
 0x27f   : > { %v505_v35 = vpop.xlane.xlu0 %504 }
 0x280   : > { %v508_v36 = vsub.f32 %v498_v30, %v505_v35 }
 0x282   : > { %v510_v37 = vmul.f32 1.442695, %v508_v36 }
 0x283   : > { %v507_v38 = vpop.xlane.xlu0 %506 }
 0x284   : > { %v509_v39 = vsub.f32 %v501_v33, %v507_v38  ;;  %802 = vpow2.f32 %v510_v37 }
 0x286   : > { %v512_v40 = vmul.f32 1.442695, %v509_v39 }
 0x288   : > { %804 = vpow2.f32 %v512_v40 }
 0x291   : > { %v803_v41 = vpop.eup %802 }
 0x292   : > { %514 = vadd.xlane.f32.xlu1 %v803_v41 }
 0x295   : > { %v805_v42 = vpop.eup %804 }
 0x296   : > { %516 = vadd.xlane.f32.xlu1 %v805_v42 }
 0x31b   : > { %v515_v43 = vpop.xlane.xlu1 %514 }
 0x31c   : > { %806 = vlog2.f32 %v515_v43 }
 0x31f   : > { %v517_v44 = vpop.xlane.xlu1 %516 }
 0x320   : > { %808 = vlog2.f32 %v517_v44 }
 0x329   : > { %v807_v45 = vpop.eup %806 }
 0x32a   : > { %v519_v46 = vmul.f32 0.6931472, %v807_v45 }
 0x32c   : > { %v522_v47 = vsub.f32 %v508_v36, %v519_v46 }
 0x32d   : > { %v809_v48 = vpop.eup %808 }
 0x32e   : > { %524 = vst [vmem:[%s314_s29] sm:$0xff] %v522_v47  ;;  %v521_v49 = vmul.f32 0.6931472, %v809_v48 }
 0x330   : > { %v523_v50 = vsub.f32 %v509_v39, %v521_v49 }
 0x332   : > { %525 = vst [vmem:[%s314_s29 + $0x8] sm:$0xff] %v523_v50 }
 0x333   : > { %892 = shalt.err (!%p889_p11)
}
 0x334   : > { %s893_s12 = scalar_lea.hbm %s1172_s11, 256  ;;  %s897_s14 = scalar_lea.hbm %s1223_s6, 512 }
 0x335   : > { %p894_p13 = scmp.ne.s32.totalorder %s1172_s11, %s893_s12  ;;  %p898_p7 = scmp.lt.s32.totalorder %s1172_s11, %s1223_s6 }
 0x336   : > { %p899_p3 = scmp.lt.s32.totalorder %s897_s14, %s893_s12 }
 0x337   : > { %p895_p0 = pnand %p894_p13, %p1248_p5 }
 0x338   : > { %p900_p9 = por %p899_p3, %p898_p7 }
 0x339   : > { %p896_p6 = pneg %p895_p0 }
 0x33b   : > { %p901_p1 = pnand %p900_p9, %p896_p6 }
 0x33d   : > { %904 = shalt.err (!%p901_p1)
}
 0x33e   : > { %s963_s20 = smov 128   ;;  %s964_s28 = smov 8  }
 0x33f   : > { %728 = dma.vmem_to_hbm [thread:$0]  (%p1248_p5), %s1174_s0, 256, %s1172_s11, %s527_s16, %s963_s20, %s963_s20, %s964_s28  }
 0x340 PF: > { %s555_s29 = sand.u32 1, %s939_s21   ;;  %p1249_p2 = scmp.ne.s32.totalorder %s1236_s10, 0 }
 0x341   : > { %p1250_p8 = scmp.ge.s32.totalorder %s951_s24, 2  ;;  %s556_s23 = scalar_lea.sflag [#allocation4], %s555_s29 }
 0x343   : > { %p742_p10 = pnand %p1250_p8, %p1249_p2 }
 0x345   : > { %p743_p4 = pneg %p742_p10 }
 0x347   : > { %934 = dma.done.wait (%p743_p4), %s556_s23, 256  }
 0x348   : > { %936 = vsyncadd (%p743_p4), %s556_s23, 4294967040  ;;  %s1251_s30 = sld [smem:[#allocation14_spill]]  ;;  %p21_p12 = scmp.ge.s32.totalorder %s1025_s27, 4  }
 0x349   : > { %s1252_s23 = sld [smem:[#allocation15_spill]]  ;;  %s1253_s21 = smov %s943_s22 }
 0x34a   : > { %s1255_s24 = smov %s1025_s27  ;;  %23 = sbr.rel (!%p21_p12) target bundleno = 9 (0x9), region = 101 }
 0x34e   : > { %s1254_s22 = smov %s1251_s30 }
 0x34f   :  { %561 = vsyncpa [#allocation3], 1 }
 0x350   :  { %563 = vsyncpa [#allocation3 + $0x1], 1 }
 0x351   :  { %564 = vsyncpa [#allocation8], 1 }
 0x352   :  { %565 = vsyncpa [#allocation4], 1 }
 0x353   :  { %567 = vsyncpa [#allocation4 + $0x1], 1 }
 0x354   :  { %568 = vsyncpa [#allocation5], 1 }
 0x355   :  { %570 = vsyncpa [#allocation5 + $0x1], 1 }

</bundles_post_ra>
